<compile_context>
chip_gen: v6e
topology: v6e:2x2x1
jax: 0.10.0
libtpu: 0.0.40
codegen_flags: <defaults>
</compile_context>

<pallas_src>
import functools

import jax
import jax.numpy as jnp
from jax.experimental import pallas as pl
from jax.experimental.pallas import tpu as pltpu


def _relu_kernel(x_ref, o_ref):
    # Pure elementwise ReLU on the whole VMEM tile (VPU work, HBM-BW bound).
    o_ref[...] = jnp.maximum(x_ref[...], jnp.zeros((), x_ref.dtype))


# Lane widths for the flattened path (widest first -> fewest rows, lane dense).
_LANE_CANDIDATES = (4096, 2048, 1024, 512, 256, 128)
# Ragged tensors up to this size run as a single whole-array VMEM block.
_SINGLE_BLOCK_MAX_BYTES = 2 * 1024 * 1024


def _cdiv(a, b):
    return -(-a // b)


def _round_up(a, b):
    return _cdiv(a, b) * b


@functools.lru_cache(maxsize=1)
def _hw_params():
    """(target_block_bytes, vmem_limit_bytes), generation aware."""
    try:
        info = pltpu.get_tpu_info()
        vmem = getattr(info, "vmem_capacity_bytes", None)
    except Exception:
        vmem = None
    if vmem is None:
        # Unknown hardware: safe on every generation (fits v5e's defaults).
        return 4 * 1024 * 1024, 32 * 1024 * 1024
    if vmem <= 64 * 1024 * 1024:
        # v7x-class (64 MiB per-TC VMEM, ~3.2 TB/s HBM): 8 MiB blocks keep the
        # ~0.35 us per-step overhead small; 4 buffers = 32 MiB < 48 MiB limit.
        return 8 * 1024 * 1024, 48 * 1024 * 1024
    # v5e/v6e (128 MiB physical VMEM): 8 MiB blocks, generous scoped limit.
    return 8 * 1024 * 1024, 64 * 1024 * 1024


def _relu_2d_tiled(x2d, rows, lane_w, dtype, itemsize, row_align,
                   target_block_bytes, vmem_limit, donate):
    """Tiled lane-dense 2D ReLU: blocks of (tile_rows, lane_w), grid over rows."""
    # Rows per block under the byte budget, aligned to the dtype sublane pack.
    budget_rows = max(row_align,
                      (target_block_bytes // (lane_w * itemsize))
                      // row_align * row_align)

    if rows <= row_align:
        # Tiny: one block spanning the full array (always a legal block shape).
        tile_rows = rows
    else:
        total_bytes = rows * lane_w * itemsize
        # Mid/large tensors: >=8 steps so both v7x TCs get >=4 pipelined steps.
        # Tiny tensors: 2 steps is enough (dual-TC) and keeps step overhead low.
        min_steps = 8 if total_bytes >= (1 << 20) else 2
        tile_rows = min(budget_rows,
                        _round_up(_cdiv(rows, min_steps), row_align))
        tile_rows = max(tile_rows, row_align)
        # Prefer an even total step count (balanced across the 2 TensorCores).
        steps = _cdiv(rows, tile_rows)
        if steps > 1 and steps % 2 == 1:
            alt = _round_up(_cdiv(rows, steps + 1), row_align)
            alt = max(alt, row_align)
            if alt <= budget_rows and _cdiv(rows, alt) % 2 == 0:
                tile_rows = alt

    grid = (_cdiv(rows, tile_rows),)

    return pl.pallas_call(
        _relu_kernel,
        out_shape=jax.ShapeDtypeStruct((rows, lane_w), dtype),
        grid_spec=pltpu.PrefetchScalarGridSpec(
            num_scalar_prefetch=0,
            grid=grid,
            in_specs=[pl.BlockSpec((tile_rows, lane_w), lambda i: (i, 0))],
            out_specs=pl.BlockSpec((tile_rows, lane_w), lambda i: (i, 0)),
        ),
        compiler_params=pltpu.CompilerParams(
            dimension_semantics=("parallel",),
            vmem_limit_bytes=vmem_limit,
        ),
        input_output_aliases=({0: 0} if donate else {}),
    )(x2d)


def _relu_single_block(x_flat, dtype, donate):
    """Whole (possibly ragged) flat array as one VMEM block; no pad/slice."""
    n = x_flat.shape[0]
    return pl.pallas_call(
        _relu_kernel,
        out_shape=jax.ShapeDtypeStruct((n,), dtype),
        input_output_aliases=({0: 0} if donate else {}),
    )(x_flat)


def simple_relu(x: jax.Array, *, donate: bool = False) -> jax.Array:
    """ReLU(x), matching torch.relu(x) semantics for any shape/dtype.

    donate=True aliases the output onto the input buffer (caller must donate x).
    """
    orig_shape = x.shape
    dtype = x.dtype
    n = x.size

    if n == 0:
        return x
    if x.ndim == 0:
        return jnp.maximum(x, jnp.zeros((), dtype))

    itemsize = jnp.dtype(dtype).itemsize
    # Sublane pack granularity: (8,128) f32, (16,128) bf16, (32,128) int8.
    row_align = max(8, 32 // itemsize)
    target_block_bytes, vmem_limit = _hw_params()

    last = orig_shape[-1]

    # Path A: last dim already lane-aligned -> tile (prod(leading), last) directly
    # (no full flatten; avoids a layout copy for non-default-layout producers).
    if (x.ndim >= 2 and last >= 128 and last % 128 == 0
            and last * itemsize * row_align <= target_block_bytes):
        rows = n // last
        x2d = jnp.reshape(x, (rows, last))
        out2d = _relu_2d_tiled(x2d, rows, last, dtype, itemsize, row_align,
                               target_block_bytes, vmem_limit, donate)
        return jnp.reshape(out2d, orig_shape)

    # Path B: flat size divisible by 128 -> lane-dense 2D view, no pad/slice.
    if n % 128 == 0:
        lane_w = next(c for c in _LANE_CANDIDATES if n % c == 0)
        rows = n // lane_w
        x2d = jnp.reshape(x, (rows, lane_w))
        out2d = _relu_2d_tiled(x2d, rows, lane_w, dtype, itemsize, row_align,
                               target_block_bytes, vmem_limit, donate)
        return jnp.reshape(out2d, orig_shape)

    # Path C: small ragged -> single whole-array block (full-array block shapes
    # are always legal), no pad, no slice, no extra HBM passes.
    if n * itemsize <= _SINGLE_BLOCK_MAX_BYTES:
        x_flat = jnp.reshape(x, (n,))
        out_flat = _relu_single_block(x_flat, dtype, donate)
        return jnp.reshape(out_flat, orig_shape)

    # Path D: large ragged -> kernel on the 128-divisible prefix, trivial
    # jnp.maximum on the (<128-element) tail.  No full-tensor pad/slice.
    n_main = (n // 128) * 128
    x_flat = jnp.reshape(x, (n,))
    main = x_flat[:n_main]
    tail = x_flat[n_main:]
    lane_w = next(c for c in _LANE_CANDIDATES if n_main % c == 0)
    rows = n_main // lane_w
    main2d = jnp.reshape(main, (rows, lane_w))
    main_out = _relu_2d_tiled(main2d, rows, lane_w, dtype, itemsize, row_align,
                              target_block_bytes, vmem_limit, donate=False)
    tail_out = jnp.maximum(tail, jnp.zeros((), dtype))
    out_flat = jnp.concatenate([jnp.reshape(main_out, (n_main,)), tail_out])
    return jnp.reshape(out_flat, orig_shape)


if __name__ == "__main__":
    key = jax.random.PRNGKey(0)
    k1, k2, k3, k4, k5 = jax.random.split(key, 5)

    # Primary case (module spec): NCHW feature map, flat size divisible by 128
    # -> Path B, single lane-dense block, no pad/slice.
    x = jax.random.normal(k1, (2, 4, 16, 16), dtype=jnp.float32)
    y = jax.block_until_ready(simple_relu(x))
    assert y.shape == x.shape and y.dtype == x.dtype
    assert bool(jnp.allclose(y, jnp.maximum(x, 0.0))), "mismatch (aligned NCHW)"

    # Last dim already a multiple of 128 -> Path A (natural last-dim tiling).
    x_lane = jax.random.normal(k2, (4, 16, 256), dtype=jnp.float32)
    y_lane = jax.block_until_ready(simple_relu(x_lane))
    assert bool(jnp.allclose(y_lane, jnp.maximum(x_lane, 0.0))), "mismatch (lane-dense)"

    # Small ragged size -> Path C (single whole-array block, no pad/slice).
    x_odd = jax.random.normal(k3, (3, 5, 7, 11), dtype=jnp.float32)
    y_odd = jax.block_until_ready(simple_relu(x_odd))
    assert bool(jnp.allclose(y_odd, jnp.maximum(x_odd, 0.0))), "mismatch (small ragged)"

    # Larger aligned case -> Path B with a multi-step (dual-TC) grid.
    x_big = jax.random.normal(k4, (4, 8, 64, 64), dtype=jnp.float32)
    y_big = jax.block_until_ready(simple_relu(x_big))
    assert bool(jnp.allclose(y_big, jnp.maximum(x_big, 0.0))), "mismatch (multi-block)"

    # Larger ragged case -> Path D (prefix kernel + tiny tail, no full pad).
    x_rag = jax.random.normal(k5, (723, 727), dtype=jnp.float32)
    y_rag = jax.block_until_ready(simple_relu(x_rag))
    assert bool(jnp.allclose(y_rag, jnp.maximum(x_rag, 0.0))), "mismatch (large ragged)"

    print("KERNEL_OK")
</pallas_src>

<mosaic_0001>
module attributes {stable_mosaic.version = 11 : i64} {
  func.func @_relu_kernel(%arg0: i32, %arg1: memref<1x2048xf32, #tpu.memory_space<vmem>>, %arg2: memref<1x2048xf32, #tpu.memory_space<vmem>>) attributes {dimension_semantics = [#tpu.dimension_semantics<parallel>], iteration_bounds = array<i64: 1>, scalar_prefetch = 0 : i64, scratch_operands = 0 : i64, tpu.core_type = #tpu.core_type<tc>, window_params = [{transform_indices = @transform_0, window_bounds = array<i64: 1, 2048>}, {transform_indices = @transform_1, window_bounds = array<i64: 1, 2048>}]} {
    %c0 = arith.constant 0 : index
    %c0_0 = arith.constant 0 : index
    %0 = vector.load %arg1[%c0, %c0_0] : memref<1x2048xf32, #tpu.memory_space<vmem>>, vector<1x2048xf32>
    %cst = arith.constant 0.000000e+00 : f32
    %1 = vector.broadcast %cst : f32 to vector<1x2048xf32>
    %2 = arith.maximumf %0, %1 : vector<1x2048xf32>
    %c0_1 = arith.constant 0 : index
    %c0_2 = arith.constant 0 : index
    %3 = vector.load %arg2[%c0_1, %c0_2] : memref<1x2048xf32, #tpu.memory_space<vmem>>, vector<1x2048xf32>
    tpu.vector_store %arg2[%c0_1, %c0_2], %2 {strides = array<i32>} : memref<1x2048xf32, #tpu.memory_space<vmem>>, vector<1x2048xf32>,
    return
  }
  func.func @transform_0(%arg0: i32) -> (i32, i32) {
    %c0_i32 = arith.constant 0 : i32
    %c0_i32_0 = arith.constant 0 : i32
    return %arg0, %c0_i32 : i32, i32
  }
  func.func @transform_1(%arg0: i32) -> (i32, i32) {
    %c0_i32 = arith.constant 0 : i32
    %c0_i32_0 = arith.constant 0 : i32
    return %arg0, %c0_i32 : i32, i32
  }
}

</mosaic_0001>

<bundles_post_ra>
// kernel: tpu_custom_call.1
= control target key start
LH: loop header
LB: loop body
LE: loop exit
PB: predicated region body
PF: predicated region fallthrough
CT: control target
= control target key end

     0   :  { %6 = vsyncpa [#allocation3], 0  ;;  %s106_s0 = inlined_call_operand.hbm [shape: f32[1,2048], index: 0, kind: input, shape index: {}]   ;;  %s107_s1 = inlined_call_operand.hbm [shape: f32[1,2048], index: 1, kind: output, shape index: {}]  }
   0x1   :  { %7 = vsyncpa [#allocation4], 0  ;;  %s88_s6 = smov [#allocation2]  }
   0x2   :  { %s14_s7 = sshll.u32 %s88_s6, 4  ;;  %s15_s7 = int_to_ptr.vmem [resolvable:$true] %s14_s7 }
   0x3   :  { %s52_s8 = scalar_lea.vmem %s15_s7, 256  ;;  %p57_p1 = scmp.lt.s32.totalorder %s15_s7, %s15_s7 }
   0x4   :  { %p53_p0 = scmp.ne.s32.totalorder %s15_s7, %s52_s8  ;;  %p58_p2 = scmp.lt.s32.totalorder %s52_s8, %s52_s8 }
   0x6   :  { %p59_p3 = por %p58_p2, %p57_p1 }
   0x8   :  { %p60_p4 = pnand %p59_p3, %p53_p0 }
   0xa   :  { %63 = shalt.err (!%p60_p4)
}
   0xb   :  { %17 = dma.hbm_to_vmem [thread:$0]  %s106_s0, 256, %s15_s7, [#allocation3]  }
   0xc   :  { %84 = dma.done.wait [#allocation3], 256  }
   0xd   :  { %85 = vsyncadd [#allocation3], 4294967040  ;;  %s89_s11 = smov [#allocation5]   ;;  %v21_v0 = vld [vmem:[#allocation2] sm:$0xff]  ;;  %v22_v1 = vld [vmem:[#allocation2 + $0x8] sm:$0xff] }
   0xe   :  { %s33_s12 = sshll.u32 %s89_s11, 4  ;;  %v23_v2 = vmax.f32 %v21_v0, 0.0  ;;  %v24_v3 = vmax.f32 %v22_v1, 0.0  ;;  %s34_s12 = int_to_ptr.vmem [resolvable:$true] %s33_s12 }
   0xf   :  { %s64_s13 = scalar_lea.vmem %s34_s12, 256  ;;  %p69_p6 = scmp.lt.s32.totalorder %s34_s12, %s34_s12 }
  0x10   :  { %25 = vst [vmem:[#allocation5] sm:$0xff] %v23_v2  ;;  %26 = vst [vmem:[#allocation5 + $0x8] sm:$0xff] %v24_v3  ;;  %p65_p5 = scmp.ne.s32.totalorder %s34_s12, %s64_s13  ;;  %p70_p7 = scmp.lt.s32.totalorder %s64_s13, %s64_s13 }
  0x12   :  { %p71_p8 = por %p70_p7, %p69_p6 }
  0x14   :  { %p72_p9 = pnand %p71_p8, %p65_p5 }
  0x16   :  { %75 = shalt.err (!%p72_p9)
}
  0x17   :  { %36 = dma.vmem_to_hbm [thread:$0]  %s34_s12, 256, %s107_s1, [#allocation4]  }
  0x18   :  { %86 = dma.done.wait [#allocation4], 256  }
  0x19   :  { %87 = vsyncadd [#allocation4], 4294967040 }
  0x1a   :  { %40 = vsyncpa [#allocation3], 1 }
  0x1b   :  { %41 = vsyncpa [#allocation4], 1 }

</bundles_post_ra>
